<compile_context>
chip_gen: v7x
topology: tpu7x:2x2x1
jax: 0.10.0
libtpu: 0.0.40
codegen_flags: <defaults>
</compile_context>

<pallas_src>
import jax
import jax.numpy as jnp
import numpy as np
from jax.experimental import pallas as pl
from jax.experimental.pallas import tpu as pltpu

# ---- small synthetic sizes ----
B = 2             # sentences in batch
S = 8             # tokens per sentence
H_IN = 32         # embedding dim fed to the synthetic encoder
H = 32            # encoder_hdim
T = 4             # labeled target words per sentence (segments of example_mask)
NUM_LABELS = 16   # proj_layer.out_features
L_PAD = 128       # lane-dense output width (labels padded to one full vreg row)
VOCAB = 100
VOCAB_PAD = 128   # embedding table rows padded to one full lane width


def classifier_kernel(tok_ref, emb_ref, enc_ref, proj_ref, out_ref):
    # tok_ref:  [3, B, S] int32 (row 0 = input_ids, 1 = input_mask, 2 = example_mask)
    # emb_ref:  [VOCAB_PAD, H_IN] f32 (rows >= VOCAB are zero)
    # enc_ref:  [H_IN + 1, H]  f32 (last row = encoder bias)
    # proj_ref: [H + 1, L_PAD] f32 (last row = proj bias; cols >= NUM_LABELS zero)
    # out_ref:  [B*T, L_PAD]   f32 lane-dense logits slab

    ids = tok_ref[0]                                       # [B, S] int32
    am = tok_ref[1].astype(jnp.float32)                    # [B, S]
    em = tok_ref[2]                                        # [B, S] int32

    # --- fused embedding gather: one-hot MXU matmul against the VMEM table ---
    # TODO(synk): for a real vocab the table should stay in HBM (pl.ANY) with a
    # DMA/row gather; at VOCAB_PAD=128 the whole table lives in VMEM.
    vocab_iota = jax.lax.broadcasted_iota(jnp.int32, (B, S, VOCAB_PAD), 2)
    tok_onehot = (ids[:, :, None] == vocab_iota).astype(jnp.float32)   # [B, S, V]
    x_emb = jnp.einsum('bsv,vh->bsh', tok_onehot, emb_ref[...],
                       preferred_element_type=jnp.float32)             # [B, S, H_IN]

    # --- encoder hot path (single batched matmul over all tokens) ---
    # TODO(synk): the real self.encoder is an externally loaded pretrained
    # transformer (architecture unspecified); replaced by one dense+tanh layer.
    w_enc = enc_ref[:H_IN, :]
    b_enc = enc_ref[H_IN:H_IN + 1, :]
    hidden = jnp.tanh(
        jnp.einsum('bsi,ih->bsh', x_emb, w_enc,
                   preferred_element_type=jnp.float32) + b_enc)        # [B, S, H]

    # --- process_encoder_outputs: block-diagonal mean pooling, batched ---
    t_iota = jax.lax.broadcasted_iota(jnp.int32, (B, T, S), 1)
    pool_onehot = (em[:, None, :] == t_iota).astype(jnp.float32)       # [B, T, S]
    counts = jnp.sum(pool_onehot, axis=2, keepdims=True)               # [B, T, 1]
    inv_counts = pl.reciprocal(jnp.maximum(counts, 1.0), approx=True)

    # padding tokens (attention mask 0) contribute zero to the sum, while the
    # count keeps every token of the target word (matching the reference).
    pooled_sum = jnp.einsum('bts,bsh->bth', pool_onehot * am[:, None, :], hidden,
                            preferred_element_type=jnp.float32)        # [B, T, H]
    pooled = (pooled_sum * inv_counts).reshape(B * T, H)               # [B*T, H]

    # --- proj_layer: Linear(H, NUM_LABELS), lane-dense padded output ---
    w_proj = proj_ref[:H, :]
    b_proj = proj_ref[H:H + 1, :]
    out_ref[...] = (jnp.dot(pooled, w_proj,
                            preferred_element_type=jnp.float32)
                    + b_proj)                                          # [B*T, L_PAD]


def prepare_params(params):
    """One-time parameter packing/padding (hoisted out of the forward path)."""
    emb, w_enc, b_enc, w_proj, b_proj = params
    emb_pad = jnp.pad(emb, ((0, VOCAB_PAD - VOCAB), (0, 0)))            # [128, H_IN]
    enc = jnp.concatenate([w_enc, b_enc], axis=0)                       # [H_IN+1, H]
    w_proj_pad = jnp.pad(w_proj, ((0, 0), (0, L_PAD - NUM_LABELS)))
    b_proj_pad = jnp.pad(b_proj, ((0, 0), (0, L_PAD - NUM_LABELS)))
    proj = jnp.concatenate([w_proj_pad, b_proj_pad], axis=0)            # [H+1, L_PAD]
    return emb_pad, enc, proj


def pretrained_classifier_forward(input_ids, input_mask, example_mask, prepared):
    emb_pad, enc, proj = prepared

    # one packed int32 tensor -> single DMA for all three token-level inputs
    tok = jnp.stack([input_ids, input_mask, example_mask]).astype(jnp.int32)  # [3,B,S]

    flops = (2 * B * S * VOCAB_PAD * H_IN      # embedding one-hot matmul
             + 2 * B * S * H_IN * H            # encoder dense
             + 2 * B * T * S * H               # block-diagonal pooling
             + 2 * B * T * H * L_PAD)          # projection
    bytes_accessed = 4 * (tok.size + emb_pad.size + enc.size + proj.size
                          + B * T * L_PAD)

    vmem = pl.BlockSpec(memory_space=pltpu.MemorySpace.VMEM)
    out = pl.pallas_call(
        classifier_kernel,
        out_shape=jax.ShapeDtypeStruct((B * T, L_PAD), jnp.float32),
        in_specs=[vmem] * 4,
        out_specs=vmem,
        cost_estimate=pl.CostEstimate(flops=flops,
                                      transcendentals=B * S * H,
                                      bytes_accessed=bytes_accessed),
    )(tok, emb_pad, enc, proj)

    # torch.cat of per-sentence outputs over the batch (T targets per sentence)
    return out[:, :NUM_LABELS]                                          # [B*T, L]


def reference_forward(input_ids, input_mask, example_mask, params):
    emb, w_enc, b_enc, w_proj, b_proj = params
    x = emb[input_ids]
    hidden = jnp.tanh(x @ w_enc + b_enc) * input_mask.astype(jnp.float32)[..., None]
    rows = []
    for b in range(B):
        for t in range(T):
            m = (example_mask[b] == t).astype(jnp.float32)
            pooled = (hidden[b] * m[:, None]).sum(0) / jnp.maximum(m.sum(), 1.0)
            rows.append(pooled @ w_proj + b_proj[0])
    return jnp.stack(rows, axis=0)


if __name__ == "__main__":
    key = jax.random.PRNGKey(0)
    k_emb, k_we, k_be, k_wp, k_bp, k_ids = jax.random.split(key, 6)

    # deterministic parameters (synthetic, no checkpoint load)
    emb = 0.02 * jax.random.normal(k_emb, (VOCAB, H_IN), dtype=jnp.float32)
    w_enc = 0.1 * jax.random.normal(k_we, (H_IN, H), dtype=jnp.float32)
    b_enc = 0.1 * jax.random.normal(k_be, (1, H), dtype=jnp.float32)
    w_proj = 0.1 * jax.random.normal(k_wp, (H, NUM_LABELS), dtype=jnp.float32)
    b_proj = 0.1 * jax.random.normal(k_bp, (1, NUM_LABELS), dtype=jnp.float32)
    params = (emb, w_enc, b_enc, w_proj, b_proj)
    prepared = prepare_params(params)   # one-time packing, outside the hot path

    # deterministic inputs
    input_ids = jax.random.randint(k_ids, (B, S), 0, VOCAB, dtype=jnp.int32)
    input_mask = jnp.array([[1, 1, 1, 1, 1, 1, 1, 1],
                            [1, 1, 1, 1, 1, 1, 0, 0]], dtype=jnp.int32)
    # example_mask: non-decreasing target indices per sentence, -1 = unlabeled
    example_mask = jnp.array([[0, 0, 1, 1, 2, 2, 3, 3],
                              [-1, 0, 1, 1, 2, 3, -1, -1]], dtype=jnp.int32)

    out = pretrained_classifier_forward(input_ids, input_mask, example_mask, prepared)
    out = jax.block_until_ready(out)

    ref = reference_forward(input_ids, input_mask, example_mask, params)
    assert out.shape == (B * T, NUM_LABELS)
    np.testing.assert_allclose(np.asarray(out), np.asarray(ref),
                               rtol=1e-3, atol=1e-3)
    print("KERNEL_OK")
</pallas_src>

<mosaic_0001>
module attributes {stable_mosaic.version = 11 : i64} {
  func.func @classifier_kernel(%arg0: memref<3x2x8xi32, #tpu.memory_space<vmem>>, %arg1: memref<128x32xf32, #tpu.memory_space<vmem>>, %arg2: memref<33x32xf32, #tpu.memory_space<vmem>>, %arg3: memref<33x128xf32, #tpu.memory_space<vmem>>, %arg4: memref<8x128xf32, #tpu.memory_space<vmem>>) attributes {dimension_semantics = [], scalar_prefetch = 0 : i64, scratch_operands = 0 : i64, tpu.core_type = #tpu.core_type<tc>} {
    %c0 = arith.constant 0 : index
    %c0_0 = arith.constant 0 : index
    %c0_1 = arith.constant 0 : index
    %0 = vector.load %arg0[%c0, %c0_0, %c0_1] : memref<3x2x8xi32, #tpu.memory_space<vmem>>, vector<1x2x8xi32>
    %1 = vector.shape_cast %0 : vector<1x2x8xi32> to vector<2x8xi32>
    %c1 = arith.constant 1 : index
    %c0_2 = arith.constant 0 : index
    %c0_3 = arith.constant 0 : index
    %2 = vector.load %arg0[%c1, %c0_2, %c0_3] : memref<3x2x8xi32, #tpu.memory_space<vmem>>, vector<1x2x8xi32>
    %3 = vector.shape_cast %2 : vector<1x2x8xi32> to vector<2x8xi32>
    %4 = arith.sitofp %3 : vector<2x8xi32> to vector<2x8xf32>
    %c2 = arith.constant 2 : index
    %c0_4 = arith.constant 0 : index
    %c0_5 = arith.constant 0 : index
    %5 = vector.load %arg0[%c2, %c0_4, %c0_5] : memref<3x2x8xi32, #tpu.memory_space<vmem>>, vector<1x2x8xi32>
    %6 = vector.shape_cast %5 : vector<1x2x8xi32> to vector<2x8xi32>
    %7 = tpu.iota {dimensions = array<i32: 2>} : vector<2x8x128xi32>
    %8 = vector.shape_cast %1 : vector<2x8xi32> to vector<2x8x1xi32>
    %9 = vector.broadcast %8 : vector<2x8x1xi32> to vector<2x8x128xi32>
    %10 = arith.cmpi eq, %9, %7 : vector<2x8x128xi32>
    %11 = arith.extui %10 : vector<2x8x128xi1> to vector<2x8x128xi32>
    %12 = arith.sitofp %11 : vector<2x8x128xi32> to vector<2x8x128xf32>
    %c0_6 = arith.constant 0 : index
    %c0_7 = arith.constant 0 : index
    %13 = vector.load %arg1[%c0_6, %c0_7] : memref<128x32xf32, #tpu.memory_space<vmem>>, vector<128x32xf32>
    "tpu.trace_start"() <{level = 10 : i32, message = "bsv,vh->bsh"}> : () -> ()
    %cst = arith.constant dense<0.000000e+00> : vector<2x8x32xf32>
    %14 = tpu.matmul %12, %13, %cst {dimension_numbers = #tpu.dot_dimension_numbers<[2], [0], [0, 1], [1], [0, 0, 0, 1, 1, 1], [], []>} : vector<2x8x128xf32>, vector<128x32xf32>, vector<2x8x32xf32> -> vector<2x8x32xf32>
    "tpu.trace_stop"() : () -> ()
    %c0_8 = arith.constant 0 : index
    %c0_9 = arith.constant 0 : index
    %15 = vector.load %arg2[%c0_8, %c0_9] : memref<33x32xf32, #tpu.memory_space<vmem>>, vector<32x32xf32>
    %c32 = arith.constant 32 : index
    %c0_10 = arith.constant 0 : index
    %16 = vector.load %arg2[%c32, %c0_10] : memref<33x32xf32, #tpu.memory_space<vmem>>, vector<1x32xf32>
    "tpu.trace_start"() <{level = 10 : i32, message = "bsi,ih->bsh"}> : () -> ()
    %cst_11 = arith.constant dense<0.000000e+00> : vector<2x8x32xf32>
    %17 = tpu.matmul %14, %15, %cst_11 {dimension_numbers = #tpu.dot_dimension_numbers<[2], [0], [0, 1], [1], [0, 0, 0, 1, 1, 1], [], []>} : vector<2x8x32xf32>, vector<32x32xf32>, vector<2x8x32xf32> -> vector<2x8x32xf32>
    "tpu.trace_stop"() : () -> ()
    %18 = vector.shape_cast %16 : vector<1x32xf32> to vector<1x1x32xf32>
    %19 = vector.broadcast %18 : vector<1x1x32xf32> to vector<2x8x32xf32>
    %20 = arith.addf %17, %19 : vector<2x8x32xf32>
    %21 = math.tanh %20 : vector<2x8x32xf32>
    %22 = tpu.iota {dimensions = array<i32: 1>} : vector<2x4x8xi32>
    %23 = vector.shape_cast %6 : vector<2x8xi32> to vector<2x1x8xi32>
    %24 = vector.broadcast %23 : vector<2x1x8xi32> to vector<2x4x8xi32>
    %25 = arith.cmpi eq, %24, %22 : vector<2x4x8xi32>
    %26 = arith.extui %25 : vector<2x4x8xi1> to vector<2x4x8xi32>
    %27 = arith.sitofp %26 : vector<2x4x8xi32> to vector<2x4x8xf32>
    %cst_12 = arith.constant dense<0.000000e+00> : vector<2x4xf32>
    %28 = vector.multi_reduction <add>, %27, %cst_12 [2] : vector<2x4x8xf32> to vector<2x4xf32>
    %29 = vector.shape_cast %28 : vector<2x4xf32> to vector<2x4x1xf32>
    %cst_13 = arith.constant 1.000000e+00 : f32
    %30 = vector.broadcast %cst_13 : f32 to vector<2x4x1xf32>
    %31 = arith.maximumf %29, %30 : vector<2x4x1xf32>
    %32 = tpu.reciprocal %31 {approx = true} : vector<2x4x1xf32> -> vector<2x4x1xf32>
    %33 = vector.shape_cast %4 : vector<2x8xf32> to vector<2x1x8xf32>
    %34 = vector.broadcast %33 : vector<2x1x8xf32> to vector<2x4x8xf32>
    %35 = arith.mulf %27, %34 : vector<2x4x8xf32>
    "tpu.trace_start"() <{level = 10 : i32, message = "bts,bsh->bth"}> : () -> ()
    %cst_14 = arith.constant dense<0.000000e+00> : vector<2x4x32xf32>
    %36 = tpu.matmul %35, %21, %cst_14 {dimension_numbers = #tpu.dot_dimension_numbers<[2], [1], [1], [2], [0, 0, 0, 1, 1, 2], [0], [0]>} : vector<2x4x8xf32>, vector<2x8x32xf32>, vector<2x4x32xf32> -> vector<2x4x32xf32>
    "tpu.trace_stop"() : () -> ()
    %37 = vector.broadcast %32 : vector<2x4x1xf32> to vector<2x4x32xf32>
    %38 = arith.mulf %36, %37 : vector<2x4x32xf32>
    %39 = vector.shape_cast %38 : vector<2x4x32xf32> to vector<8x32xf32>
    %c0_15 = arith.constant 0 : index
    %c0_16 = arith.constant 0 : index
    %40 = vector.load %arg3[%c0_15, %c0_16] : memref<33x128xf32, #tpu.memory_space<vmem>>, vector<32x128xf32>
    %c32_17 = arith.constant 32 : index
    %c0_18 = arith.constant 0 : index
    %41 = vector.load %arg3[%c32_17, %c0_18] : memref<33x128xf32, #tpu.memory_space<vmem>>, vector<1x128xf32>
    %cst_19 = arith.constant dense<0.000000e+00> : vector<8x128xf32>
    %42 = tpu.matmul %39, %40, %cst_19 {dimension_numbers = #tpu.dot_dimension_numbers<[1], [0], [0], [1], [0, 0, 1, 1], [], []>} : vector<8x32xf32>, vector<32x128xf32>, vector<8x128xf32> -> vector<8x128xf32>
    %43 = vector.broadcast %41 : vector<1x128xf32> to vector<8x128xf32>
    %44 = arith.addf %42, %43 : vector<8x128xf32>
    %c0_20 = arith.constant 0 : index
    %c0_21 = arith.constant 0 : index
    %45 = vector.load %arg4[%c0_20, %c0_21] : memref<8x128xf32, #tpu.memory_space<vmem>>, vector<8x128xf32>
    tpu.vector_store %arg4[%c0_20, %c0_21], %44 {strides = array<i32>} : memref<8x128xf32, #tpu.memory_space<vmem>>, vector<8x128xf32>,
    return
  }
}

</mosaic_0001>

<bundles_post_ra>
// kernel: tpu_custom_call.1
= control target key start
LH: loop header
LB: loop body
LE: loop exit
PB: predicated region body
PF: predicated region fallthrough
CT: control target
= control target key end

     0   :  { %v24_v0 = vlaneseq  ;;  %s912_s0 = inlined_call_operand.vmem [shape: s32[3,2,8], index: 0, kind: input, shape index: {}]   ;;  %s913_s1 = inlined_call_operand.vmem [shape: f32[128,32], index: 1, kind: input, shape index: {}]   ;;  %s914_s2 = inlined_call_operand.vmem [shape: f32[33,32], index: 2, kind: input, shape index: {}]   ;;  %s915_s3 = inlined_call_operand.vmem [shape: f32[33,128], index: 3, kind: input, shape index: {}]   ;;  %s916_s4 = inlined_call_operand.hbm [shape: f32[8,128], index: 4, kind: output, shape index: {}]  }
   0x1   :  { %v46_v1 = vld [vmem:[%s913_s1] sm:$0xff]  ;;  %v47_v2 = vld [vmem:[%s913_s1 + $0x8] sm:$0xff]  ;;  %v48_v4 = vld [vmem:[%s913_s1 + $0x10] sm:$0xff] }
   0x2   :  { %v678_v3 = vpack.c.bf16 %v47_v2, %v46_v1  ;;  %v49_v5 = vld [vmem:[%s913_s1 + $0x18] sm:$0xff]  ;;  %v805_v6 = vshrl.u32 %v24_v0, 7  ;;  %v50_v8 = vld [vmem:[%s913_s1 + $0x20] sm:$0xff]  ;;  %v51_v9 = vld [vmem:[%s913_s1 + $0x28] sm:$0xff] }
   0x3   :  { %v682_v7 = vpack.c.bf16 %v49_v5, %v48_v4  ;;  %v18_v10 = vld [vmem:[%s912_s0] sm:$0x3]  ;;  %v686_v13 = vpack.c.bf16 %v51_v9, %v50_v8  ;;  %v52_v14 = vld [vmem:[%s913_s1 + $0x30] sm:$0xff]  ;;  %v53_v15 = vld [vmem:[%s913_s1 + $0x38] sm:$0xff] }
   0x4   :  { %679 = vmatprep.subr.bf16.mxu0 %v678_v3  ;;  %v817_v11 = vsub.s32 0, %v805_v6  ;;  %v35_v12 = vsub.s32 1, %v805_v6  ;;  %v137_v16 = vld [vmem:[%s914_s2] sm:$0xff]  ;;  %v138_v18 = vld [vmem:[%s914_s2 + $0x8] sm:$0xff]  ;;  %v139_v19 = vld [vmem:[%s914_s2 + $0x10] sm:$0xff] }
   0x5   :  { %681 = vmatpush3.bf16.msra.mxu0 %v678_v3  ;;  %v140_v20 = vld [vmem:[%s914_s2 + $0x18] sm:$0xff]  ;;  %v710_v21 = vpack.c.bf16 %v138_v18, %v137_v16 }
   0x6   :  { %683 = vmatprep.subr.bf16.mxu0 %v682_v7  ;;  %v29_v17 = vrot.slane %v18_v10, %v817_v11  ;;  %v714_v22 = vpack.c.bf16 %v140_v20, %v139_v19 }
   0x7   :  { %9 = vsyncpa [#allocation3], 0  ;;  %v36_v23 = vrot.slane %v18_v10, %v35_v12  ;;  %v690_v24 = vpack.c.bf16 %v53_v15, %v52_v14  ;;  %711 = vmatprep.subr.bf16.mxu1 %v710_v21  ;;  %v54_v25 = vld [vmem:[%s913_s1 + $0x40] sm:$0xff]  ;;  %v55_v26 = vld [vmem:[%s913_s1 + $0x48] sm:$0xff]  ;;  %v25_v37 = vand.u32 127, %v24_v0  ;;  %v762_v39 = vmov 1.0  }
   0x8   :  { %31 = vbcast.lane.b32.xlu0 %v29_v17, 256  ;;  %713 = vmatpush3.bf16.msra.mxu1 %v710_v21  ;;  %v694_v27 = vpack.c.bf16 %v55_v26, %v54_v25  ;;  %v56_v28 = vld [vmem:[%s913_s1 + $0x50] sm:$0xff]  ;;  %v57_v29 = vld [vmem:[%s913_s1 + $0x58] sm:$0xff]  ;;  %v58_v31 = vld [vmem:[%s913_s1 + $0x60] sm:$0xff]  ;;  %vm146_vm2 = vcmask 261120   ;;  %v764_v46 = vmov 0.0  }
   0x9   :  { %685 = vmatpush3.bf16.msra.mxu0 %v682_v7  ;;  %715 = vmatprep.subr.bf16.mxu1 %v714_v22  ;;  %v698_v30 = vpack.c.bf16 %v57_v29, %v56_v28  ;;  %v59_v32 = vld [vmem:[%s913_s1 + $0x68] sm:$0xff]  ;;  %v60_v34 = vld [vmem:[%s913_s1 + $0x70] sm:$0xff]  ;;  %v61_v35 = vld [vmem:[%s913_s1 + $0x78] sm:$0xff]  ;;  %v763_v43 = vmov 1966171168   ;;  %vm765_vm4 = vmmov 0  }
   0xa   :  { %687 = vmatprep.subr.bf16.mxu0 %v686_v13  ;;  %v702_v33 = vpack.c.bf16 %v59_v32, %v58_v31  ;;  %v706_v36 = vpack.c.bf16 %v61_v35, %v60_v34  ;;  %v241_v44 = vunpack.c.l.s4 %v763_v43  ;;  %v562_v47 = vld [vmem:[%s912_s0 + $0x2] sm:$0x3]  ;;  %v571_v50 = vld.sshfl [vmem:[%s912_s0 + $0x4] sm:$0x11 pattern:$0x75316420] }
   0xb   :  { %v21_v48 = vcvt.s32.f32 %v562_v47  ;;  %v239_v55 = vcombine.high %v571_v50, %v571_v50  ;;  %vm268_vm6 = vcmask 60416   ;;  %v568_v4 = vld [vmem:[%s914_s2 + $0x20] ss:$0 sm:$0xff]  ;;  %vm314_vm7 = vcmask 64512   ;;  %v465_v15 = vld [vmem:[%s915_s3 + $0x10] sm:$0xff]  ;;  %v466_v16 = vld [vmem:[%s915_s3 + $0x18] sm:$0xff] }
   0xc   :  { %38 = vbcast.lane.b32.xlu0 %v36_v23, 256  ;;  %717 = vmatpush3.bf16.msra.mxu1 %v714_v22  ;;  %v242_v45 = vunpack.c.0.s8 %v241_v44  ;;  %v463_v12 = vld [vmem:[%s915_s3] sm:$0xff]  ;;  %v722_v17 = vpack.c.bf16 %v466_v16, %v465_v15  ;;  %s767_s18 = smov [#allocation2]  }
   0xd   :  { %689 = vmatpush3.bf16.msra.mxu0 %v686_v13  ;;  %657 = vmatprep.subr.mxu1 %v764_v46  ;;  %v464_v13 = vld [vmem:[%s915_s3 + $0x8] sm:$0xff]  ;;  %v576_v31 = vld [vmem:[%s915_s3 + $0x20] ss:$0 sm:$0xff]  ;;  %s554_s19 = sshll.u32 %s767_s18, 4  ;;  %s555_s19 = int_to_ptr.vmem [resolvable:$true] %s554_s19 }
   0xe   :  { %691 = vmatprep.subr.bf16.mxu0 %v690_v24  ;;  %v245_v49 = vsub.s32 %v242_v45, %v805_v6  ;;  %v719_v14 = vpack.c.bf16 %v464_v13, %v463_v12  ;;  %s738_s20 = scalar_lea.vmem %s555_s19, 128  ;;  %p743_p1 = scmp.lt.s32.totalorder %s555_s19, %s555_s19 }
   0xf   :  { %p739_p0 = scmp.ne.s32.totalorder %s555_s19, %s738_s20  ;;  %p744_p2 = scmp.lt.s32.totalorder %s738_s20, %s738_s20 }
  0x10   :  { %v246_v51 = vrot.slane %v571_v50, %v245_v49  ;;  %v286_v52 = vrot.slane %v21_v48, %v245_v49  ;;  %v253_v57 = vrot.slane %v239_v55, %v245_v49 }
  0x11   :  { %693 = vmatpush3.bf16.msra.mxu0 %v690_v24  ;;  %p745_p3 = por %p744_p2, %p743_p1 }
  0x12   :  { %695 = vmatprep.subr.bf16.mxu0 %v694_v27  ;;  %v257_v53 = vrot.slane %v246_v51, %v817_v11  ;;  %v294_v54 = vrot.slane %v286_v52, %v245_v49  ;;  %v287_v58 = vcombine.high %v286_v52, %v286_v52  ;;  %v261_v61 = vrot.slane %v253_v57, %v817_v11 }
  0x13   :  { %p746_p4 = pnand %p745_p3, %p739_p0 }
  0x14   :  { %vm262_vm3 = vcmp.eq.s32.totalorder %v257_v53, %v805_v6  ;;  %v305_v56 = vrot.slane %v294_v54, %v817_v11  ;;  %v301_v62 = vrot.slane %v287_v58, %v245_v49  ;;  %vm263_vm5 = vcmp.eq.s32.totalorder %v261_v61, %v805_v6 }
  0x15   :  { %697 = vmatpush3.bf16.msra.mxu0 %v694_v27  ;;  %v572_v59 = vsel %vm262_vm3, 1.0, %v764_v46  ;;  %v573_v0 = vsel %vm263_vm5, 1.0, %v764_v46 }
  0x16   :  { %699 = vmatprep.subr.bf16.mxu0 %v698_v30  ;;  %v312_v60 = vmul.f32 %v572_v59, %v305_v56  ;;  %v309_v63 = vrot.slane %v301_v62, %v817_v11  ;;  %v269_v2 = vsel %vm268_vm6, %v572_v59, 0.0  ;;  %v272_v3 = vsel %vm268_vm6, %v573_v0, 0.0 }
  0x17   :  { %270 = vadd.xlane.f32.xlu1 %v269_v2  ;;  %v766_v11 = vmov 0.0|0.0  }
  0x18   :  { %v313_v1 = vmul.f32 %v573_v0, %v309_v63 }
  0x19   :  { %701 = vmatpush3.bf16.msra.mxu0 %v698_v30 }
  0x1a   :  { %703 = vmatprep.subr.bf16.mxu0 %v702_v33 }
  0x1b   :  { %273 = vadd.xlane.f32.xlu1 %v272_v3 }
  0x1d   :  { %705 = vmatpush3.bf16.msra.mxu0 %v702_v33 }
  0x1e   :  { %707 = vmatprep.subr.bf16.mxu0 %v706_v36 }
  0x21   :  { %709 = vmatpush3.bf16.msra.mxu0 %v706_v36 }
  0x7a   :  { %v32_v38 = vpop.permute.xlu0 %31 }
  0x7b   :  { %vm40_vm0 = vcmp.eq.s32.totalorder %v32_v38, %v25_v37 }
  0x7c   :  { %643 = vmatprep.mubr.msk.f32.mxu0 %vm40_vm0, %v762_v39 }
  0x7e   :  { %v39_v40 = vpop.permute.xlu0 %38 }
  0x7f   :  { %vm41_vm1 = vcmp.eq.s32.totalorder %v39_v40, %v25_v37 }
  0x80   :  { %644 = vmatmul.mubr.msk.f32.vlgmr.msra.gmra.mrb[0].mxu0 %vm41_vm1, %v762_v39 }
  0xa4   :  { %v271_v18 = vpop.xlane.xlu1 %270 }
  0xa5   :  { %v275_v20 = vmax.f32 %v271_v18, 1.0 }
  0xa8   :  { %v274_v19 = vpop.xlane.xlu1 %273 }
  0xa9   :  { %v276_v21 = vmax.f32 %v274_v19, 1.0 }
 0x153   :  { %v645_v41 = vpop.f32.mrb[0].mxu0 }
 0x154   :  { %v128_v42 = vpop.f32.mrb[1].mxu0 }
 0x155   :  { %654 = vmatprep.mubr.msk.f32.mxu1 %vm146_vm2, %v128_v42 }
 0x156   :  { %655 = vmatmul.mubr.msk.f32.vlgmr.msra.gmra.mrb[0].mxu1 %vm146_vm2, %v645_v41 }
 0x157   :  { %659 = vmatprep.mubr.msk.f32.mxu1 %vm765_vm4, %v764_v46 }
 0x229   :  { %v656_v5 = vpop.f32.mrb[0].mxu1 }
 0x22a   :  { %v219_v7 = vpop.f32.mrb[1].mxu1  ;;  %v225_v8 = vadd.f32 %v656_v5, %v568_v4 }
 0x22b   :  { %v220_v9 = vadd.f32 %v568_v4, %v219_v7 }
 0x22d   :  { %730 = vtanh.f32 %v220_v9 }
 0x22e   :  { %732 = vtanh.f32 %v225_v8 }
 0x22f   :  { %734 = vrcp.f32 %v275_v20 }
 0x230   :  { %736 = vrcp.f32 %v276_v21 }
 0x237   :  { %v731_v6 = vpop.eup %730 }
 0x238   :  { %658 = vmatpush3.msra.mxu1 %v731_v6  ;;  %v733_v10 = vpop.eup %732 }
 0x239   :  { %660 = vmatmul.mubr.msk.f32.vlgmr.msra.gmra.mrb[2].mxu1 %vm314_vm7, %v312_v60  ;;  %662 = vmatprep.subr.mxu1 %v764_v46  ;;  %v735_v23 = vpop.eup %734 }
 0x23a   :  { %663 = vmatpush3.msra.mxu1 %v733_v10  ;;  %664 = vmatprep.mubr.msk.f32.mxu1 %vm765_vm4, %v764_v46  ;;  %v737_v25 = vpop.eup %736 }
 0x23b   :  { %718 = vmatprep.subr.bf16.mxu1 %v766_v11 }
 0x23d   :  { %665 = vmatmul.mubr.msk.f32.vlgmr.msra.gmra.mrb[4].mxu1 %vm314_vm7, %v313_v1 }
 0x23e   :  { %675 = vmatprep.mubr.msk.f32.mxu1 %vm765_vm4, %v764_v46  ;;  %720 = vmatpush3.bf16.msra.mxu1 %v719_v14 }
 0x23f   :  { %721 = vmatprep.subr.bf16.mxu1 %v766_v11 }
 0x242   :  { %723 = vmatpush3.bf16.msra.mxu1 %v722_v17 }
 0x30c   :  { %v384_v22 = vpop.f32.mrb[2].mxu1 }
 0x30d   :  { %v661_v24 = vpop.f32.mrb[3].mxu1  ;;  %v461_v27 = vmul.f32 %v735_v23, %v384_v22 }
 0x310   :  { %v457_v26 = vpop.f32.mrb[4].mxu1 }
 0x311   :  { %v462_v28 = vmul.f32 %v737_v25, %v457_v26  ;;  %v666_v29 = vpop.f32.mrb[5].mxu1 }
 0x313   :  { %v474_v30 = vcombine.low %v461_v27, %v462_v28 }
 0x315   :  { %676 = vmatmul.mubr.msk.f32.vlgmr.msra.gmra.mrb[6].mxu1 %vm146_vm2, %v474_v30 }
 0x3e8   :  { %v543_v32 = vpop.f32.mrb[6].mxu1 }
 0x3e9   :  { %v544_v33 = vadd.f32 %v576_v31, %v543_v32  ;;  %v677_v34 = vpop.f32.mrb[7].mxu1 }
 0x3eb   :  { %547 = vst [vmem:[#allocation2] sm:$0xff] %v544_v33 }
 0x3ec   :  { %749 = shalt.err (!%p746_p4)
}
 0x3ed   :  { %s750_s23 = scalar_lea.hbm %s916_s4, 128 }
 0x3ee   :  { %p751_p5 = scmp.ne.s32.totalorder %s916_s4, %s750_s23  ;;  %p754_p6 = scmp.lt.u32.totalorder %s750_s23, %s916_s4 }
 0x3f0   :  { %p756_p7 = pnand %p754_p6, %p751_p5 }
 0x3f2   :  { %759 = shalt.err (!%p756_p7)
}
 0x3f3   :  { %557 = dma.vmem_to_hbm [thread:$0]  %s555_s19, 128, %s916_s4, [#allocation3]  }
 0x3f4   :  { %760 = dma.done.wait [#allocation3], 128  }
 0x3f5   :  { %761 = vsyncadd [#allocation3], 4294967168 }
 0x3f6   :  { %561 = vsyncpa [#allocation3], 1 }

</bundles_post_ra>
